<compile_context>
chip_gen: v5e
topology: v5e:2x2
jax: 0.10.0
libtpu: 0.0.40
codegen_flags: <defaults>
</compile_context>

<pallas_src>
import jax
import jax.numpy as jnp
from jax.experimental import pallas as pl
from jax.experimental.pallas import tpu as pltpu

_LANES = 128           # TPU vreg lane count (last dim).
_SUBLANES = 8          # TPU vreg sublane count (second-to-last dim).
_MAX_BLOCK_ROWS = 512  # 512 x 128 f32 = 256 KiB per block (VMEM-safe on v7x).


def _identity_kernel(rv_ref, out_ref):
    # Forward pass: y_pred = rv  (pure parameter read).
    out_ref[...] = rv_ref[...]


def telluric_velocity_forward(rv):
    """Pallas forward of telluric_velocity: returns rv unchanged.

    rv: float array of shape (num_obs,); result is float32 of the same shape.
    """
    num_obs = rv.shape[0]
    if rv.dtype != jnp.float32:
        rv = rv.astype(jnp.float32)

    # Shape the 1-D parameter into a lane/sublane-dense (rows, 128) slab.
    rows = pl.cdiv(num_obs, _LANES)
    rows = ((rows + _SUBLANES - 1) // _SUBLANES) * _SUBLANES
    rows = max(rows, _SUBLANES)
    if rows > _MAX_BLOCK_ROWS:
        # Tile: round rows up to a multiple of the block height.
        rows = ((rows + _MAX_BLOCK_ROWS - 1) // _MAX_BLOCK_ROWS) * _MAX_BLOCK_ROWS
        block_rows = _MAX_BLOCK_ROWS
    else:
        block_rows = rows

    padded_len = rows * _LANES
    if padded_len == num_obs:
        rv_padded = rv.reshape(rows, _LANES)
    else:
        rv_padded = jnp.pad(rv, (0, padded_len - num_obs)).reshape(rows, _LANES)

    grid = (rows // block_rows,)
    out2d = pl.pallas_call(
        _identity_kernel,
        out_shape=jax.ShapeDtypeStruct((rows, _LANES), jnp.float32),
        grid=grid,
        in_specs=[pl.BlockSpec((block_rows, _LANES), lambda i: (i, 0))],
        out_specs=pl.BlockSpec((block_rows, _LANES), lambda i: (i, 0)),
        # Pure identity: reuse the input HBM buffer for the output.
        input_output_aliases={0: 0},
        compiler_params=pltpu.CompilerParams(
            dimension_semantics=("parallel",),
        ),
    )(rv_padded)

    return out2d.reshape(-1)[:num_obs]


if __name__ == "__main__":
    # num_obs is spec_shifted.shape[0] in the original script; pick a small
    # deterministic value here.  The PyTorch module initializes rv to zeros,
    # but forward() is an identity on whatever rv holds, so we exercise it
    # with deterministic non-trivial values to make the check meaningful.
    num_obs = 8
    key = jax.random.PRNGKey(0)
    rv = jax.random.normal(key, (num_obs,), dtype=jnp.float32)

    y_pred = telluric_velocity_forward(rv)
    jax.block_until_ready(y_pred)

    # Check semantics: forward() returns the parameter itself.
    assert y_pred.shape == (num_obs,)
    assert y_pred.dtype == jnp.float32
    assert bool(jnp.all(y_pred == rv))

    # Also sanity-check the zero-initialized case from the module's __init__.
    rv_zero = jnp.zeros((num_obs,), dtype=jnp.float32)
    y_zero = telluric_velocity_forward(rv_zero)
    jax.block_until_ready(y_zero)
    assert bool(jnp.all(y_zero == 0.0))

    print("KERNEL_OK")
</pallas_src>

<mosaic_0001>
module attributes {stable_mosaic.version = 11 : i64} {
  func.func @_identity_kernel(%arg0: i32, %arg1: memref<8x128xf32, #tpu.memory_space<vmem>>, %arg2: memref<8x128xf32, #tpu.memory_space<vmem>>) attributes {dimension_semantics = [#tpu.dimension_semantics<parallel>], iteration_bounds = array<i64: 1>, scalar_prefetch = 0 : i64, scratch_operands = 0 : i64, tpu.core_type = #tpu.core_type<tc>, window_params = [{transform_indices = @transform_0, window_bounds = array<i64: 8, 128>}, {transform_indices = @transform_1, window_bounds = array<i64: 8, 128>}]} {
    %c0 = arith.constant 0 : index
    %c0_0 = arith.constant 0 : index
    %0 = vector.load %arg1[%c0, %c0_0] : memref<8x128xf32, #tpu.memory_space<vmem>>, vector<8x128xf32>
    %c0_1 = arith.constant 0 : index
    %c0_2 = arith.constant 0 : index
    %1 = vector.load %arg2[%c0_1, %c0_2] : memref<8x128xf32, #tpu.memory_space<vmem>>, vector<8x128xf32>
    tpu.vector_store %arg2[%c0_1, %c0_2], %0 {strides = array<i32>} : memref<8x128xf32, #tpu.memory_space<vmem>>, vector<8x128xf32>,
    return
  }
  func.func @transform_0(%arg0: i32) -> (i32, i32) {
    %c0_i32 = arith.constant 0 : i32
    %c0_i32_0 = arith.constant 0 : i32
    return %arg0, %c0_i32 : i32, i32
  }
  func.func @transform_1(%arg0: i32) -> (i32, i32) {
    %c0_i32 = arith.constant 0 : i32
    %c0_i32_0 = arith.constant 0 : i32
    return %arg0, %c0_i32 : i32, i32
  }
}

</mosaic_0001>

<bundles_post_ra>
// kernel: tpu_custom_call.1
= control target key start
LH: loop header
LB: loop body
LE: loop exit
PB: predicated region body
PF: predicated region fallthrough
CT: control target
= control target key end

     0   :  { %6 = vsyncpa [#allocation3], 0  ;;  %s114_s0 = inlined_call_operand.hbm [shape: f32[8,128], index: 0, kind: input, shape index: {}, may-alias: {0,1}]   ;;  %s115_s1 = inlined_call_operand.hbm [shape: f32[8,128], index: 1, kind: output, shape index: {}, may-alias: {0,1}]  }
   0x1   :  { %7 = vsyncpa [#allocation4], 0  ;;  %s13_s8 = sshll.u32 %s114_s0, 4  ;;  %s96_s9 = smov [#allocation2]   ;;  %s14_s8 = int_to_ptr.hbm [resolvable:$true] %s13_s8 }
   0x2   :  { %s15_s10 = sshll.u32 %s96_s9, 4  ;;  %s16_s10 = int_to_ptr.vmem [resolvable:$true] %s15_s10 }
   0x3   :  { %18 = dma.hbm_to_vmem [thread:$0]  %s14_s8, 128, %s16_s10, [#allocation3]  }
   0x4   :  { %92 = dma.done.wait [#allocation3], 128  }
   0x5   :  { %93 = vsyncadd [#allocation3], 4294967168  ;;  %s97_s11 = smov [#allocation5]   ;;  %s32_s15 = sshll.u32 %s115_s1, 4  ;;  %v23_v0 = vld [vmem:[#allocation2] sm:$0xff]  ;;  %s33_s15 = int_to_ptr.hbm [resolvable:$true] %s32_s15 }
   0x6   :  { %s30_s12 = sshll.u32 %s97_s11, 4  ;;  %24 = vst [vmem:[#allocation5] sm:$0xff] %v23_v0  ;;  %s31_s12 = int_to_ptr.vmem [resolvable:$true] %s30_s12 }
   0x7   :  { %35 = dma.vmem_to_hbm [thread:$0]  %s31_s12, 128, %s33_s15, [#allocation4]  }
   0x8   :  { %94 = dma.done.wait [#allocation4], 128  }
   0x9   :  { %95 = vsyncadd [#allocation4], 4294967168 }
   0xa   :  { %40 = vsyncpa [#allocation3], 1 }
   0xb   :  { %41 = vsyncpa [#allocation4], 1 }

</bundles_post_ra>
